<compile_context>
chip_gen: v7x
topology: tpu7x:2x2x1
jax: 0.10.0
libtpu: 0.0.40
codegen_flags: <defaults>
</compile_context>

<pallas_src>
import jax
import jax.numpy as jnp
from jax.experimental import pallas as pl
from jax.experimental.pallas import tpu as pltpu

LANE = 128
SUBLANE_BF16 = 16


def _round_up(n, m):
    return ((n + m - 1) // m) * m


def mlp_kernel(x_ref, w1_ref, b1_ref, w2_ref, b2_ref, w3_ref, b3_ref, o_ref):
    # x arrives f32 straight from HBM; cast to bf16 in-kernel so the wrapper
    # never runs a separate un-fused cast pass over the largest tensor.
    x = x_ref[...].astype(jnp.bfloat16)
    # fc1: bf16 MXU operands, f32 accumulation; bias + ReLU stay f32 (VPU).
    h1 = jnp.dot(x, w1_ref[...], preferred_element_type=jnp.float32)
    h1 = jnp.maximum(h1 + b1_ref[...], 0.0)
    # fc2 (H2 lane-padded to 128)
    h2 = jnp.dot(h1.astype(jnp.bfloat16), w2_ref[...],
                 preferred_element_type=jnp.float32)
    h2 = jnp.maximum(h2 + b2_ref[...], 0.0)
    # fc3 (D_out lane-padded to 128); bf16 store halves the writeback.
    o = jnp.dot(h2.astype(jnp.bfloat16), w3_ref[...],
                preferred_element_type=jnp.float32)
    o_ref[...] = (o + b3_ref[...]).astype(o_ref.dtype)


def prepare_params(w1, b1, w2, b2, w3, b3):
    """One-time param packing: lane-pad narrow dims, cast weights to bf16.

    Call at init / checkpoint load, NOT per forward call. Weights are stored
    (in_features, out_features), so forward is x @ W + b (== torch x @ W.T + b).
    """
    D_in, H1 = w1.shape
    H2 = w2.shape[1]
    D_out = w3.shape[1]
    H2p = _round_up(H2, LANE)
    Dop = _round_up(D_out, LANE)

    b1 = jnp.reshape(b1, (1, H1))
    b2 = jnp.reshape(b2, (1, H2))
    b3 = jnp.reshape(b3, (1, D_out))

    # Zero-padding of columns/rows is mathematically inert.
    w2p = jnp.pad(w2, ((0, 0), (0, H2p - H2)))
    b2p = jnp.pad(b2, ((0, 0), (0, H2p - H2)))
    w3p = jnp.pad(w3, ((0, H2p - H2), (0, Dop - D_out)))
    b3p = jnp.pad(b3, ((0, 0), (0, Dop - D_out)))

    packed = dict(
        w1=w1.astype(jnp.bfloat16), b1=b1.astype(jnp.float32),
        w2=w2p.astype(jnp.bfloat16), b2=b2p.astype(jnp.float32),
        w3=w3p.astype(jnp.bfloat16), b3=b3p.astype(jnp.float32),
    )
    return packed, D_out


def mlp_forward(x, packed, d_out, *, batch_tile=1024, slice_output=True):
    """Fused forward of ReLU(ReLU(x@w1+b1)@w2+b2)@w3+b3 in one pallas_call."""
    w1, b1 = packed["w1"], packed["b1"]
    w2, b2 = packed["w2"], packed["b2"]
    w3, b3 = packed["w3"], packed["b3"]

    B, D_in = x.shape
    H1 = w1.shape[1]
    H2p = w2.shape[1]
    Dop = w3.shape[1]

    # Batch tiling:
    #  * multiple of 16 (bf16 sublane packing),
    #  * as large as batch_tile allows (amortizes ~0.35us/step pipeline cost),
    #  * >= 2 grid steps when the batch permits so ("parallel",) can shard
    #    across both TensorCores on v7x.
    tile = _round_up(min(batch_tile, _round_up(B, SUBLANE_BF16)), SUBLANE_BF16)
    if _round_up(B, tile) // tile < 2 and B > SUBLANE_BF16:
        tile = _round_up(pl.cdiv(B, 2), SUBLANE_BF16)
    B_pad = _round_up(B, tile)
    if B_pad != B:
        x = jnp.pad(x, ((0, B_pad - B), (0, 0)))
    grid = (B_pad // tile,)

    x = x.astype(jnp.float32)  # no-op for f32 inputs; bf16 cast happens in-kernel

    flops = 2 * B_pad * (D_in * H1 + H1 * H2p + H2p * Dop)
    bytes_accessed = (
        4 * x.size                                   # x read (f32, once)
        + 2 * (w1.size + w2.size + w3.size)          # bf16 weights
        + 4 * (b1.size + b2.size + b3.size)          # f32 biases
        + 2 * B_pad * Dop)                           # bf16 output write

    def weight_spec(shape):
        # Constant across grid steps -> single-buffered, no per-step re-DMA.
        return pl.BlockSpec(shape, lambda i: (0, 0),
                            pipeline_mode=pl.Buffered(1))

    out_padded = pl.pallas_call(
        mlp_kernel,
        out_shape=jax.ShapeDtypeStruct((B_pad, Dop), jnp.bfloat16),
        grid_spec=pltpu.PrefetchScalarGridSpec(
            num_scalar_prefetch=0,
            grid=grid,
            in_specs=[
                # x tile: default double-buffering.
                # TODO(synk): bump to pl.Buffered(3) if profiling shows the
                # x DMA exposed after raising the tile.
                pl.BlockSpec((tile, D_in), lambda i: (i, 0)),
                weight_spec((D_in, H1)),   # w1
                weight_spec((1, H1)),      # b1
                weight_spec((H1, H2p)),    # w2 (lane-padded)
                weight_spec((1, H2p)),     # b2
                weight_spec((H2p, Dop)),   # w3 (lane-padded)
                weight_spec((1, Dop)),     # b3
            ],
            out_specs=pl.BlockSpec((tile, Dop), lambda i: (i, 0)),
        ),
        compiler_params=pltpu.CompilerParams(
            dimension_semantics=("parallel",),
            vmem_limit_bytes=32 * 1024 * 1024),
        cost_estimate=pl.CostEstimate(
            flops=flops, transcendentals=0, bytes_accessed=bytes_accessed),
    )(x, w1, b1, w2, b2, w3, b3)

    if slice_output:
        # Single tiny slice + cast back to the module's (B, 10) f32 interface.
        return out_padded[:B, :d_out].astype(jnp.float32)
    return out_padded  # (B_pad, 128) bf16: let the consumer slice lazily


def init_params(key):
    # Deterministic synthetic init (shapes match nn.Linear(784,256),(256,64),(64,10)).
    k1, k2, k3, k4, k5, k6 = jax.random.split(key, 6)

    def uinit(k, shape, fan_in):
        bound = 1.0 / jnp.sqrt(fan_in)
        return jax.random.uniform(k, shape, jnp.float32, -bound, bound)

    w1 = uinit(k1, (784, 256), 784)
    b1 = uinit(k2, (1, 256), 784)
    w2 = uinit(k3, (256, 64), 256)
    b2 = uinit(k4, (1, 64), 256)
    w3 = uinit(k5, (64, 10), 64)
    b3 = uinit(k6, (1, 10), 64)
    return w1, b1, w2, b2, w3, b3


if __name__ == "__main__":
    key = jax.random.PRNGKey(0)
    kx, kp = jax.random.split(key)

    w1, b1, w2, b2, w3, b3 = init_params(kp)
    packed, d_out = prepare_params(w1, b1, w2, b2, w3, b3)  # one-time packing

    def ref_fwd(xx):  # pure-JAX f32 reference
        h = jnp.maximum(xx @ w1 + b1, 0.0)
        h = jnp.maximum(h @ w2 + b2, 0.0)
        return h @ w3 + b3

    # Small batches: B=10 exercises the padding path (grid of 1),
    # B=96 exercises a 2-step grid (v7x megacore-shardable path).
    for B in (10, 96):
        x = jax.random.normal(jax.random.fold_in(kx, B), (B, 28 * 28),
                              dtype=jnp.float32)
        out = jax.block_until_ready(mlp_forward(x, packed, d_out))
        ref = ref_fwd(x)
        assert out.shape == (B, 10)
        err = float(jnp.max(jnp.abs(out - ref)))
        # bf16 MXU operands + bf16 writeback -> loosened tolerance vs f32 torch.
        assert err < 5e-2, err

    print("KERNEL_OK")
</pallas_src>

<mosaic_0001>
module attributes {stable_mosaic.version = 11 : i64} {
  func.func @mlp_kernel(%arg0: i32, %arg1: memref<16x784xf32, #tpu.memory_space<vmem>>, %arg2: memref<784x256xbf16, #tpu.memory_space<vmem>>, %arg3: memref<1x256xf32, #tpu.memory_space<vmem>>, %arg4: memref<256x128xbf16, #tpu.memory_space<vmem>>, %arg5: memref<1x128xf32, #tpu.memory_space<vmem>>, %arg6: memref<128x128xbf16, #tpu.memory_space<vmem>>, %arg7: memref<1x128xf32, #tpu.memory_space<vmem>>, %arg8: memref<16x128xbf16, #tpu.memory_space<vmem>>) attributes {dimension_semantics = [#tpu.dimension_semantics<parallel>], iteration_bounds = array<i64: 1>, scalar_prefetch = 0 : i64, scratch_operands = 0 : i64, tpu.core_type = #tpu.core_type<tc>, window_params = [{transform_indices = @transform_0, window_bounds = array<i64: 16, 784>}, {pipeline_mode = #tpu.pipeline_mode<synchronous>, transform_indices = @transform_1, window_bounds = array<i64: 784, 256>}, {pipeline_mode = #tpu.pipeline_mode<synchronous>, transform_indices = @transform_2, window_bounds = array<i64: 1, 256>}, {pipeline_mode = #tpu.pipeline_mode<synchronous>, transform_indices = @transform_3, window_bounds = array<i64: 256, 128>}, {pipeline_mode = #tpu.pipeline_mode<synchronous>, transform_indices = @transform_4, window_bounds = array<i64: 1, 128>}, {pipeline_mode = #tpu.pipeline_mode<synchronous>, transform_indices = @transform_5, window_bounds = array<i64: 128, 128>}, {pipeline_mode = #tpu.pipeline_mode<synchronous>, transform_indices = @transform_6, window_bounds = array<i64: 1, 128>}, {transform_indices = @transform_7, window_bounds = array<i64: 16, 128>}]} {
    %c0 = arith.constant 0 : index
    %c0_0 = arith.constant 0 : index
    %0 = vector.load %arg1[%c0, %c0_0] : memref<16x784xf32, #tpu.memory_space<vmem>>, vector<16x784xf32>
    %1 = arith.truncf %0 : vector<16x784xf32> to vector<16x784xbf16>
    %c0_1 = arith.constant 0 : index
    %c0_2 = arith.constant 0 : index
    %2 = vector.load %arg2[%c0_1, %c0_2] : memref<784x256xbf16, #tpu.memory_space<vmem>>, vector<784x256xbf16>
    %cst = arith.constant dense<0.000000e+00> : vector<16x256xf32>
    %3 = tpu.matmul %1, %2, %cst {dimension_numbers = #tpu.dot_dimension_numbers<[1], [0], [0], [1], [0, 0, 1, 1], [], []>} : vector<16x784xbf16>, vector<784x256xbf16>, vector<16x256xf32> -> vector<16x256xf32>
    %c0_3 = arith.constant 0 : index
    %c0_4 = arith.constant 0 : index
    %4 = vector.load %arg3[%c0_3, %c0_4] : memref<1x256xf32, #tpu.memory_space<vmem>>, vector<1x256xf32>
    %5 = vector.broadcast %4 : vector<1x256xf32> to vector<16x256xf32>
    %6 = arith.addf %3, %5 : vector<16x256xf32>
    %cst_5 = arith.constant 0.000000e+00 : f32
    %7 = vector.broadcast %cst_5 : f32 to vector<16x256xf32>
    %8 = arith.maximumf %6, %7 : vector<16x256xf32>
    %9 = arith.truncf %8 : vector<16x256xf32> to vector<16x256xbf16>
    %c0_6 = arith.constant 0 : index
    %c0_7 = arith.constant 0 : index
    %10 = vector.load %arg4[%c0_6, %c0_7] : memref<256x128xbf16, #tpu.memory_space<vmem>>, vector<256x128xbf16>
    %cst_8 = arith.constant dense<0.000000e+00> : vector<16x128xf32>
    %11 = tpu.matmul %9, %10, %cst_8 {dimension_numbers = #tpu.dot_dimension_numbers<[1], [0], [0], [1], [0, 0, 1, 1], [], []>} : vector<16x256xbf16>, vector<256x128xbf16>, vector<16x128xf32> -> vector<16x128xf32>
    %c0_9 = arith.constant 0 : index
    %c0_10 = arith.constant 0 : index
    %12 = vector.load %arg5[%c0_9, %c0_10] : memref<1x128xf32, #tpu.memory_space<vmem>>, vector<1x128xf32>
    %13 = vector.broadcast %12 : vector<1x128xf32> to vector<16x128xf32>
    %14 = arith.addf %11, %13 : vector<16x128xf32>
    %cst_11 = arith.constant 0.000000e+00 : f32
    %15 = vector.broadcast %cst_11 : f32 to vector<16x128xf32>
    %16 = arith.maximumf %14, %15 : vector<16x128xf32>
    %17 = arith.truncf %16 : vector<16x128xf32> to vector<16x128xbf16>
    %c0_12 = arith.constant 0 : index
    %c0_13 = arith.constant 0 : index
    %18 = vector.load %arg6[%c0_12, %c0_13] : memref<128x128xbf16, #tpu.memory_space<vmem>>, vector<128x128xbf16>
    %cst_14 = arith.constant dense<0.000000e+00> : vector<16x128xf32>
    %19 = tpu.matmul %17, %18, %cst_14 {dimension_numbers = #tpu.dot_dimension_numbers<[1], [0], [0], [1], [0, 0, 1, 1], [], []>} : vector<16x128xbf16>, vector<128x128xbf16>, vector<16x128xf32> -> vector<16x128xf32>
    %c0_15 = arith.constant 0 : index
    %c0_16 = arith.constant 0 : index
    %20 = vector.load %arg7[%c0_15, %c0_16] : memref<1x128xf32, #tpu.memory_space<vmem>>, vector<1x128xf32>
    %21 = vector.broadcast %20 : vector<1x128xf32> to vector<16x128xf32>
    %22 = arith.addf %19, %21 : vector<16x128xf32>
    %23 = arith.truncf %22 : vector<16x128xf32> to vector<16x128xbf16>
    %c0_17 = arith.constant 0 : index
    %c0_18 = arith.constant 0 : index
    %24 = vector.load %arg8[%c0_17, %c0_18] : memref<16x128xbf16, #tpu.memory_space<vmem>>, vector<16x128xbf16>
    tpu.vector_store %arg8[%c0_17, %c0_18], %23 {strides = array<i32>} : memref<16x128xbf16, #tpu.memory_space<vmem>>, vector<16x128xbf16>,
    return
  }
  func.func @transform_0(%arg0: i32) -> (i32, i32) {
    %c0_i32 = arith.constant 0 : i32
    %c0_i32_0 = arith.constant 0 : i32
    return %arg0, %c0_i32 : i32, i32
  }
  func.func @transform_1(%arg0: i32) -> (i32, i32) {
    %c0_i32 = arith.constant 0 : i32
    %c0_i32_0 = arith.constant 0 : i32
    %c0_i32_1 = arith.constant 0 : i32
    return %c0_i32, %c0_i32_0 : i32, i32
  }
  func.func @transform_2(%arg0: i32) -> (i32, i32) {
    %c0_i32 = arith.constant 0 : i32
    %c0_i32_0 = arith.constant 0 : i32
    %c0_i32_1 = arith.constant 0 : i32
    return %c0_i32, %c0_i32_0 : i32, i32
  }
  func.func @transform_3(%arg0: i32) -> (i32, i32) {
    %c0_i32 = arith.constant 0 : i32
    %c0_i32_0 = arith.constant 0 : i32
    %c0_i32_1 = arith.constant 0 : i32
    return %c0_i32, %c0_i32_0 : i32, i32
  }
  func.func @transform_4(%arg0: i32) -> (i32, i32) {
    %c0_i32 = arith.constant 0 : i32
    %c0_i32_0 = arith.constant 0 : i32
    %c0_i32_1 = arith.constant 0 : i32
    return %c0_i32, %c0_i32_0 : i32, i32
  }
  func.func @transform_5(%arg0: i32) -> (i32, i32) {
    %c0_i32 = arith.constant 0 : i32
    %c0_i32_0 = arith.constant 0 : i32
    %c0_i32_1 = arith.constant 0 : i32
    return %c0_i32, %c0_i32_0 : i32, i32
  }
  func.func @transform_6(%arg0: i32) -> (i32, i32) {
    %c0_i32 = arith.constant 0 : i32
    %c0_i32_0 = arith.constant 0 : i32
    %c0_i32_1 = arith.constant 0 : i32
    return %c0_i32, %c0_i32_0 : i32, i32
  }
  func.func @transform_7(%arg0: i32) -> (i32, i32) {
    %c0_i32 = arith.constant 0 : i32
    %c0_i32_0 = arith.constant 0 : i32
    return %arg0, %c0_i32 : i32, i32
  }
}

</mosaic_0001>

<bundles_post_ra>
// kernel: tpu_custom_call.1
= control target key start
LH: loop header
LB: loop body
LE: loop exit
PB: predicated region body
PF: predicated region fallthrough
CT: control target
= control target key end

     0   :  { %12 = vsyncpa [#allocation3], 0  ;;  %s1842_s0 = inlined_call_operand.hbm [shape: f32[16,784], index: 0, kind: input, shape index: {}]   ;;  %s1843_s1 = inlined_call_operand.hbm [shape: bf16[784,256], index: 1, kind: input, shape index: {}]   ;;  %s1844_s2 = inlined_call_operand.vmem [shape: f32[1,256], index: 2, kind: input, shape index: {}]   ;;  %s1845_s3 = inlined_call_operand.hbm [shape: bf16[256,128], index: 3, kind: input, shape index: {}]   ;;  %s1846_s4 = inlined_call_operand.vmem [shape: f32[1,128], index: 4, kind: input, shape index: {}]   ;;  %s1847_s5 = inlined_call_operand.hbm [shape: bf16[128,128], index: 5, kind: input, shape index: {}]   ;;  %s1848_s6 = inlined_call_operand.vmem [shape: f32[1,128], index: 6, kind: input, shape index: {}]   ;;  %s1849_s7 = inlined_call_operand.hbm [shape: bf16[16,128], index: 7, kind: output, shape index: {}]  }
   0x1   :  { %13 = vsyncpa [#allocation6], 0 }
   0x2   :  { %14 = vsyncpa [#allocation9], 0 }
   0x3   :  { %15 = vsyncpa [#allocation4], 0  ;;  %s1710_s24 = smov [#allocation5]   ;;  %s1592_s28 = scalar_lea.hbm %s1843_s1, 12544 }
   0x4   :  { %s33_s25 = sshll.u32 %s1710_s24, 4  ;;  %p1593_p0 = scmp.ne.s32.totalorder %s1843_s1, %s1592_s28  ;;  %s34_s25 = int_to_ptr.vmem [resolvable:$true] %s33_s25 }
   0x5   :  { %p1596_p1 = scmp.lt.u32.totalorder %s1592_s28, %s1843_s1 }
   0x7   :  { %p1598_p2 = pnand %p1596_p1, %p1593_p0 }
   0x9   :  { %1601 = shalt.err (!%p1598_p2)
}
   0xa   :  { %s1602_s10 = scalar_lea.vmem %s34_s25, 12544  ;;  %p1607_p4 = scmp.lt.s32.totalorder %s34_s25, %s34_s25 }
   0xb   :  { %p1603_p3 = scmp.ne.s32.totalorder %s34_s25, %s1602_s10  ;;  %p1608_p5 = scmp.lt.s32.totalorder %s1602_s10, %s1602_s10 }
   0xd   :  { %p1609_p6 = por %p1608_p5, %p1607_p4 }
   0xf   :  { %p1610_p7 = pnand %p1609_p6, %p1603_p3 }
  0x11   :  { %1613 = shalt.err (!%p1610_p7)
}
  0x12   :  { %s1711_s11 = smov 128   ;;  %s1712_s12 = smov 8  }
  0x13   :  { %39 = dma.hbm_to_vmem [thread:$0]  %s1843_s1, 12544, %s34_s25, [#allocation6], %s1711_s11, %s1711_s11, %s1712_s12  }
  0x14   :  { %s1713_s15 = smov [#allocation2]   ;;  %s1614_s19 = scalar_lea.hbm %s1842_s0, 1792 }
  0x15   :  { %s21_s16 = sshll.u32 %s1713_s15, 4  ;;  %p1615_p8 = scmp.ne.s32.totalorder %s1842_s0, %s1614_s19  ;;  %s22_s16 = int_to_ptr.vmem [resolvable:$true] %s21_s16 }
  0x16   :  { %p1618_p9 = scmp.lt.u32.totalorder %s1614_s19, %s1842_s0 }
  0x18   :  { %p1620_p10 = pnand %p1618_p9, %p1615_p8 }
  0x1a   :  { %1623 = shalt.err (!%p1620_p10)
}
  0x1b   :  { %s1624_s24 = scalar_lea.vmem %s22_s16, 1792  ;;  %p1629_p12 = scmp.lt.s32.totalorder %s22_s16, %s22_s16 }
  0x1c   :  { %p1625_p11 = scmp.ne.s32.totalorder %s22_s16, %s1624_s24  ;;  %p1630_p13 = scmp.lt.s32.totalorder %s1624_s24, %s1624_s24 }
  0x1e   :  { %p1631_p0 = por %p1630_p13, %p1629_p12 }
  0x20   :  { %p1632_p1 = pnand %p1631_p0, %p1625_p11 }
  0x22   :  { %1635 = shalt.err (!%p1632_p1)
}
  0x23   :  { %s1714_s1 = smov 896   ;;  %s1715_s25 = smov 56  }
  0x24   :  { %27 = dma.hbm_to_vmem [thread:$0]  %s1842_s0, 1792, %s22_s16, [#allocation3], %s1714_s1, %s1714_s1, %s1715_s25  }
  0x25   :  { %s1716_s28 = smov [#allocation7]   ;;  %s1636_s9 = scalar_lea.hbm %s1845_s3, 2048 }
  0x26   :  { %s47_s29 = sshll.u32 %s1716_s28, 4  ;;  %p1637_p2 = scmp.ne.s32.totalorder %s1845_s3, %s1636_s9  ;;  %s48_s29 = int_to_ptr.vmem [resolvable:$true] %s47_s29 }
  0x27   :  { %p1640_p3 = scmp.lt.u32.totalorder %s1636_s9, %s1845_s3 }
  0x29   :  { %p1642_p4 = pnand %p1640_p3, %p1637_p2 }
  0x2b   :  { %1645 = shalt.err (!%p1642_p4)
}
  0x2c   :  { %s1646_s14 = scalar_lea.vmem %s48_s29, 2048  ;;  %p1651_p6 = scmp.lt.s32.totalorder %s48_s29, %s48_s29 }
  0x2d   :  { %p1647_p5 = scmp.ne.s32.totalorder %s48_s29, %s1646_s14  ;;  %p1652_p7 = scmp.lt.s32.totalorder %s1646_s14, %s1646_s14 }
  0x2f   :  { %p1653_p8 = por %p1652_p7, %p1651_p6 }
  0x31   :  { %p1654_p9 = pnand %p1653_p8, %p1647_p5 }
  0x33   :  { %1657 = shalt.err (!%p1654_p9)
}
  0x34   :  { %s1717_s0 = smov 64   ;;  %s1718_s15 = smov 4  }
  0x35   :  { %53 = dma.hbm_to_vmem [thread:$0]  %s1845_s3, 2048, %s48_s29, [#allocation6], %s1717_s0, %s1717_s0, %s1718_s15  }
  0x36   :  { %s1719_s18 = smov [#allocation8]   ;;  %s1658_s22 = scalar_lea.hbm %s1847_s5, 1024 }
  0x37   :  { %s61_s19 = sshll.u32 %s1719_s18, 4  ;;  %p1659_p10 = scmp.ne.s32.totalorder %s1847_s5, %s1658_s22  ;;  %s62_s19 = int_to_ptr.vmem [resolvable:$true] %s61_s19 }
  0x38   :  { %p1662_p11 = scmp.lt.u32.totalorder %s1658_s22, %s1847_s5 }
  0x3a   :  { %p1664_p12 = pnand %p1662_p11, %p1659_p10 }
  0x3c   :  { %1667 = shalt.err (!%p1664_p12)
}
  0x3d   :  { %s1668_s26 = scalar_lea.vmem %s62_s19, 1024  ;;  %p1673_p0 = scmp.lt.s32.totalorder %s62_s19, %s62_s19 }
  0x3e   :  { %p1669_p13 = scmp.ne.s32.totalorder %s62_s19, %s1668_s26  ;;  %p1674_p1 = scmp.lt.s32.totalorder %s1668_s26, %s1668_s26 }
  0x40   :  { %p1675_p2 = por %p1674_p1, %p1673_p0 }
  0x42   :  { %p1676_p3 = pnand %p1675_p2, %p1669_p13 }
  0x44   :  { %1679 = shalt.err (!%p1676_p3)
}
  0x45   :  { %67 = dma.hbm_to_vmem [thread:$0]  %s1847_s5, 1024, %s62_s19, [#allocation9], %s1717_s0, %s1717_s0, %s1718_s15  }
  0x46   :  { %1702 = dma.done.wait [#allocation3], 1792  }
  0x47   :  { %1703 = vsyncadd [#allocation3], 4294965504 }
  0x48   :  { %1704 = dma.done.wait [#allocation6], 14592  }
  0x49   :  { %1705 = vsyncadd [#allocation6], 4294952704 }
  0x4a   :  { %1706 = dma.done.wait [#allocation9], 1024  }
  0x4b   :  { %1707 = vsyncadd [#allocation9], 4294966272  ;;  %v1421_v0 = vld [vmem:[#allocation5 + $0x104] ss:$8 sps:$4 sm:$0xff]   ;;  %v1423_v1 = vld [vmem:[#allocation5 + $0x100] ss:$8 sps:$4 sm:$0xff]  }
  0x4c   :  { %751 = vmatprep.subr.bf16.mxu0 %v1421_v0  ;;  %v1424_v2 = vld [vmem:[#allocation5 + $0x114] ss:$8 sps:$4 sm:$0xff]   ;;  %v1426_v3 = vld [vmem:[#allocation5 + $0x110] ss:$8 sps:$4 sm:$0xff]   ;;  %v1427_v4 = vld [vmem:[#allocation5 + $0x124] ss:$8 sps:$4 sm:$0xff]  }
  0x4d   :  { %752 = vmatpush1.bf16.msra.mxu0 %v1423_v1  ;;  %v1429_v5 = vld [vmem:[#allocation5 + $0x120] ss:$8 sps:$4 sm:$0xff]   ;;  %v1430_v6 = vld [vmem:[#allocation5 + $0x134] ss:$8 sps:$4 sm:$0xff]   ;;  %v1432_v7 = vld [vmem:[#allocation5 + $0x130] ss:$8 sps:$4 sm:$0xff]  }
  0x4e   :  { %753 = vmatprep.subr.bf16.mxu0 %v1424_v2  ;;  %v1433_v8 = vld [vmem:[#allocation5 + $0x144] ss:$8 sps:$4 sm:$0xff]   ;;  %v1435_v9 = vld [vmem:[#allocation5 + $0x140] ss:$8 sps:$4 sm:$0xff]   ;;  %v1436_v10 = vld [vmem:[#allocation5 + $0x154] ss:$8 sps:$4 sm:$0xff]  }
  0x4f   :  { %v1438_v11 = vld [vmem:[#allocation5 + $0x150] ss:$8 sps:$4 sm:$0xff]   ;;  %v1439_v12 = vld [vmem:[#allocation5 + $0x164] ss:$8 sps:$4 sm:$0xff]   ;;  %v1441_v16 = vld [vmem:[#allocation5 + $0x160] ss:$8 sps:$4 sm:$0xff]  }
  0x50   :  { %v86_v13 = vld [vmem:[#allocation2 + $0x18] sm:$0xff]  ;;  %v93_v14 = vld [vmem:[#allocation2 + $0x50] sm:$0xff]  ;;  %v1442_v17 = vld [vmem:[#allocation5 + $0x174] ss:$8 sps:$4 sm:$0xff]   ;;  %vm704_vm0 = vcmask 130048   ;;  %vm1722_vm1 = vmmov 0  }
  0x51   :  { %754 = vmatpush1.bf16.msra.mxu0 %v1426_v3  ;;  %v100_v15 = vpack.c.bf16 %v93_v14, %v86_v13  ;;  %v1475_v18 = vld [vmem:[#allocation5 + $0x4] ss:$8 sps:$4 sm:$0xff]   ;;  %v1444_v19 = vld [vmem:[#allocation5 + $0x170] ss:$8 sps:$4 sm:$0xff]   ;;  %v1480_v21 = vld [vmem:[#allocation5] ss:$8 sps:$4 sm:$0xff]  }
  0x52   :  { %755 = vmatprep.subr.bf16.mxu0 %v1427_v4  ;;  %v1445_v20 = vld [vmem:[#allocation5 + $0x184] ss:$8 sps:$4 sm:$0xff]   ;;  %708 = vmatprep.subr.bf16.mxu1 %v1475_v18  ;;  %v1481_v22 = vld [vmem:[#allocation5 + $0x14] ss:$8 sps:$4 sm:$0xff]   ;;  %v1447_v23 = vld [vmem:[#allocation5 + $0x180] ss:$8 sps:$4 sm:$0xff]  }
  0x53   :  { %783 = vmatprep.mubr.bf16.mxu0 %v100_v15  ;;  %709 = vmatpush1.bf16.msra.mxu1 %v1480_v21  ;;  %v1486_v24 = vld [vmem:[#allocation5 + $0x10] ss:$8 sps:$4 sm:$0xff]   ;;  %v1487_v25 = vld [vmem:[#allocation5 + $0x24] ss:$8 sps:$4 sm:$0xff]   ;;  %v1448_v26 = vld [vmem:[#allocation5 + $0x194] ss:$8 sps:$4 sm:$0xff]  }
  0x54   :  { %710 = vmatprep.subr.bf16.mxu1 %v1481_v22  ;;  %v1492_v27 = vld [vmem:[#allocation5 + $0x20] ss:$8 sps:$4 sm:$0xff]   ;;  %v1493_v28 = vld [vmem:[#allocation5 + $0x34] ss:$8 sps:$4 sm:$0xff]   ;;  %v1450_v29 = vld [vmem:[#allocation5 + $0x190] ss:$8 sps:$4 sm:$0xff]  }
  0x55   :  { %756 = vmatpush1.bf16.msra.mxu0 %v1429_v5  ;;  %v1451_v30 = vld [vmem:[#allocation5 + $0x1a4] ss:$8 sps:$4 sm:$0xff]   ;;  %v1498_v31 = vld [vmem:[#allocation5 + $0x30] ss:$8 sps:$4 sm:$0xff]   ;;  %v1453_v33 = vld [vmem:[#allocation5 + $0x1a0] ss:$8 sps:$4 sm:$0xff]  }
  0x56   :  { %757 = vmatprep.subr.bf16.mxu0 %v1430_v6  ;;  %v1499_v32 = vld [vmem:[#allocation5 + $0x44] ss:$8 sps:$4 sm:$0xff]   ;;  %v1454_v34 = vld [vmem:[#allocation5 + $0x1b4] ss:$8 sps:$4 sm:$0xff]   ;;  %v1504_v35 = vld [vmem:[#allocation5 + $0x40] ss:$8 sps:$4 sm:$0xff]  }
  0x57   :  { %711 = vmatpush1.bf16.msra.mxu1 %v1486_v24  ;;  %v1505_v36 = vld [vmem:[#allocation5 + $0x54] ss:$8 sps:$4 sm:$0xff]   ;;  %v1456_v37 = vld [vmem:[#allocation5 + $0x1b0] ss:$8 sps:$4 sm:$0xff]   ;;  %v1457_v38 = vld [vmem:[#allocation5 + $0x1c4] ss:$8 sps:$4 sm:$0xff]  }
  0x58   :  { %712 = vmatprep.subr.bf16.mxu1 %v1487_v25  ;;  %v1510_v39 = vld [vmem:[#allocation5 + $0x50] ss:$8 sps:$4 sm:$0xff]   ;;  %v1511_v40 = vld [vmem:[#allocation5 + $0x64] ss:$8 sps:$4 sm:$0xff]   ;;  %v1459_v41 = vld [vmem:[#allocation5 + $0x1c0] ss:$8 sps:$4 sm:$0xff]  }
  0x59   :  { %758 = vmatpush1.bf16.msra.mxu0 %v1432_v7  ;;  %v1460_v42 = vld [vmem:[#allocation5 + $0x1d4] ss:$8 sps:$4 sm:$0xff]   ;;  %v1516_v43 = vld [vmem:[#allocation5 + $0x60] ss:$8 sps:$4 sm:$0xff]   ;;  %v1462_v45 = vld [vmem:[#allocation5 + $0x1d0] ss:$8 sps:$4 sm:$0xff]  }
  0x5a   :  { %759 = vmatprep.subr.bf16.mxu0 %v1433_v8  ;;  %v1517_v44 = vld [vmem:[#allocation5 + $0x74] ss:$8 sps:$4 sm:$0xff]   ;;  %v1463_v46 = vld [vmem:[#allocation5 + $0x1e4] ss:$8 sps:$4 sm:$0xff]   ;;  %v1522_v47 = vld [vmem:[#allocation5 + $0x70] ss:$8 sps:$4 sm:$0xff]  }
  0x5b   :  { %713 = vmatpush1.bf16.msra.mxu1 %v1492_v27  ;;  %v1523_v48 = vld [vmem:[#allocation5 + $0x84] ss:$8 sps:$4 sm:$0xff]   ;;  %v1465_v49 = vld [vmem:[#allocation5 + $0x1e0] ss:$8 sps:$4 sm:$0xff]   ;;  %v1466_v50 = vld [vmem:[#allocation5 + $0x1f4] ss:$8 sps:$4 sm:$0xff]  }
  0x5c   :  { %714 = vmatprep.subr.bf16.mxu1 %v1493_v28  ;;  %v1528_v51 = vld [vmem:[#allocation5 + $0x80] ss:$8 sps:$4 sm:$0xff]   ;;  %v1529_v52 = vld [vmem:[#allocation5 + $0x94] ss:$8 sps:$4 sm:$0xff]   ;;  %v1468_v53 = vld [vmem:[#allocation5 + $0x1f0] ss:$8 sps:$4 sm:$0xff]  }
  0x5d   :  { %760 = vmatpush1.bf16.msra.mxu0 %v1435_v9  ;;  %v85_v54 = vld [vmem:[#allocation2 + $0x10] sm:$0xff]  ;;  %v92_v55 = vld [vmem:[#allocation2 + $0x48] sm:$0xff]  ;;  %v95_v62 = vld [vmem:[#allocation2 + $0x60] sm:$0xff]  ;;  %s1723_s9 = smov [#allocation10]  }
  0x5e   :  { %761 = vmatprep.subr.bf16.mxu0 %v1436_v10  ;;  %v1471_v56 = vld [vmem:[#allocation5 + $0x204] ss:$8 sps:$4 sm:$0xff]   ;;  %v1534_v57 = vld [vmem:[#allocation5 + $0x90] ss:$8 sps:$4 sm:$0xff]   ;;  %v1469_v58 = vld [vmem:[#allocation5 + $0x200] ss:$8 sps:$4 sm:$0xff]   ;;  %v99_v59 = vpack.c.bf16 %v92_v55, %v85_v54 }
  0x5f   :  { %715 = vmatpush1.bf16.msra.mxu1 %v1498_v31  ;;  %v1535_v60 = vld [vmem:[#allocation5 + $0xa4] ss:$8 sps:$4 sm:$0xff]   ;;  %v88_v61 = vld [vmem:[#allocation2 + $0x28] sm:$0xff]  ;;  %v1540_v1 = vld [vmem:[#allocation5 + $0xa0] ss:$8 sps:$4 sm:$0xff]  }
  0x60   :  { %716 = vmatprep.subr.bf16.mxu1 %v1499_v32  ;;  %v1474_v63 = vld [vmem:[#allocation5 + $0x214] ss:$8 sps:$4 sm:$0xff]   ;;  %v102_v0 = vpack.c.bf16 %v95_v62, %v88_v61  ;;  %v1472_v3 = vld [vmem:[#allocation5 + $0x210] ss:$8 sps:$4 sm:$0xff]   ;;  %v1479_v4 = vld [vmem:[#allocation5 + $0x224] ss:$8 sps:$4 sm:$0xff]  }
  0x61   :  { %762 = vmatpush1.bf16.msra.mxu0 %v1438_v11  ;;  %v1541_v2 = vld [vmem:[#allocation5 + $0xb4] ss:$8 sps:$4 sm:$0xff]   ;;  %v1546_v7 = vld [vmem:[#allocation5 + $0xb0] ss:$8 sps:$4 sm:$0xff]   ;;  %v1547_v9 = vld [vmem:[#allocation5 + $0xc4] ss:$8 sps:$4 sm:$0xff]  }
  0x62   :  { %763 = vmatprep.subr.bf16.mxu0 %v1439_v12  ;;  %v84_v5 = vld [vmem:[#allocation2 + $0x8] sm:$0xff]  ;;  %v91_v6 = vld [vmem:[#allocation2 + $0x40] sm:$0xff]  ;;  %v1477_v10 = vld [vmem:[#allocation5 + $0x220] ss:$8 sps:$4 sm:$0xff]   ;;  %v1720_v61 = vmov 0  }
  0x63   :  { %717 = vmatpush1.bf16.msra.mxu1 %v1504_v35  ;;  %v98_v8 = vpack.c.bf16 %v91_v6, %v84_v5  ;;  %v1485_v11 = vld [vmem:[#allocation5 + $0x234] ss:$8 sps:$4 sm:$0xff]   ;;  %v1552_v12 = vld [vmem:[#allocation5 + $0xc0] ss:$8 sps:$4 sm:$0xff]   ;;  %v1483_v14 = vld [vmem:[#allocation5 + $0x230] ss:$8 sps:$4 sm:$0xff]  }
  0x64   :  { %718 = vmatprep.subr.bf16.mxu1 %v1505_v36  ;;  %v1553_v13 = vld [vmem:[#allocation5 + $0xd4] ss:$8 sps:$4 sm:$0xff]   ;;  %v1491_v15 = vld [vmem:[#allocation5 + $0x244] ss:$8 sps:$4 sm:$0xff]   ;;  %v1495_v22 = vld [vmem:[#allocation5 + $0x250] ss:$8 sps:$4 sm:$0xff]  }
  0x65   :  { %764 = vmatpush1.bf16.msra.mxu0 %v1441_v16  ;;  %740 = vmatprep.mubr.bf16.mxu1 %v98_v8  ;;  %v1489_v16 = vld [vmem:[#allocation5 + $0x240] ss:$8 sps:$4 sm:$0xff]   ;;  %v1497_v18 = vld [vmem:[#allocation5 + $0x254] ss:$8 sps:$4 sm:$0xff]   ;;  %v1567_v24 = vld [vmem:[#allocation5 + $0xf0] ss:$8 sps:$4 sm:$0xff]  }
  0x66   :  { %765 = vmatprep.subr.bf16.mxu0 %v1442_v17  ;;  %v1558_v17 = vld [vmem:[#allocation5 + $0xd0] ss:$8 sps:$4 sm:$0xff]   ;;  %v1565_v21 = vld [vmem:[#allocation5 + $0xf4] ss:$8 sps:$4 sm:$0xff]   ;;  %v1501_v28 = vld [vmem:[#allocation5 + $0x260] ss:$8 sps:$4 sm:$0xff]  }
  0x67   :  { %719 = vmatpush1.bf16.msra.mxu1 %v1510_v39  ;;  %v83_v25 = vld [vmem:[#allocation2] sm:$0xff]  ;;  %v1570_v32 = vld [vmem:[#allocation7 + $0x48] sm:$0xff]   ;;  %v1572_v36 = vld [vmem:[#allocation7 + $0x50] sm:$0xff]   ;;  %v1721_v8 = vmov 0.0  }
  0x68   :  { %720 = vmatprep.subr.bf16.mxu1 %v1511_v40  ;;  %v1568_v27 = vld [vmem:[#allocation7 + $0x40] sm:$0xff]   ;;  %v1571_v35 = vld [vmem:[#allocation7 + $0x8] sm:$0xff]   ;;  %v1573_v39 = vld [vmem:[#allocation7 + $0x10] sm:$0xff]  }
  0x69   :  { %766 = vmatpush1.bf16.msra.mxu0 %v1444_v19  ;;  %v1559_v19 = vld [vmem:[#allocation5 + $0xe4] ss:$8 sps:$4 sm:$0xff]   ;;  %v1569_v31 = vld [vmem:[#allocation7] sm:$0xff]  }
  0x6a   :  { %767 = vmatprep.subr.bf16.mxu0 %v1445_v20  ;;  %v1564_v20 = vld [vmem:[#allocation5 + $0xe0] ss:$8 sps:$4 sm:$0xff]   ;;  %v1557_v54 = vld [vmem:[#allocation5 + $0x2f4] ss:$8 sps:$4 sm:$0xff]   ;;  %v1555_v55 = vld [vmem:[#allocation5 + $0x2f0] ss:$8 sps:$4 sm:$0xff]  }
  0x6b   :  { %721 = vmatpush1.bf16.msra.mxu1 %v1516_v43  ;;  %v1574_v40 = vld [vmem:[#allocation7 + $0x58] sm:$0xff]   ;;  %v89_v62 = vld [vmem:[#allocation2 + $0x30] sm:$0xff] }
  0x6c   :  { %722 = vmatprep.subr.bf16.mxu1 %v1517_v44  ;;  %v1575_v43 = vld [vmem:[#allocation7 + $0x18] sm:$0xff]   ;;  %v1576_v44 = vld [vmem:[#allocation7 + $0x60] sm:$0xff]   ;;  %v1581_v5 = vld [vmem:[#allocation7 + $0x30] sm:$0xff]  }
  0x6d   :  { %768 = vmatpush1.bf16.msra.mxu0 %v1447_v23  ;;  %v1503_v23 = vld [vmem:[#allocation5 + $0x264] ss:$8 sps:$4 sm:$0xff]  }
  0x6e   :  { %769 = vmatprep.subr.bf16.mxu0 %v1448_v26  ;;  %v90_v26 = vld [vmem:[#allocation2 + $0x38] sm:$0xff] }
  0x6f   :  { %723 = vmatpush1.bf16.msra.mxu1 %v1522_v47  ;;  %v1531_v47 = vld [vmem:[#allocation5 + $0x2b0] ss:$8 sps:$4 sm:$0xff]   ;;  %v1582_v6 = vld [vmem:[#allocation7 + $0x78] sm:$0xff]  }
  0x70   :  { %724 = vmatprep.subr.bf16.mxu1 %v1523_v48  ;;  %v1539_v48 = vld [vmem:[#allocation5 + $0x2c4] ss:$8 sps:$4 sm:$0xff]  }
  0x71   :  { %770 = vmatpush1.bf16.msra.mxu0 %v1450_v29  ;;  %v1509_v29 = vld [vmem:[#allocation5 + $0x274] ss:$8 sps:$4 sm:$0xff]  }
  0x72   :  { %771 = vmatprep.subr.bf16.mxu0 %v1451_v30  ;;  %v97_v30 = vpack.c.bf16 %v90_v26, %v83_v25 }
  0x73   :  { %725 = vmatpush1.bf16.msra.mxu1 %v1528_v51  ;;  %v1543_v51 = vld [vmem:[#allocation5 + $0x2d0] ss:$8 sps:$4 sm:$0xff]  }
  0x74   :  { %726 = vmatprep.subr.bf16.mxu1 %v1529_v52  ;;  %v1551_v52 = vld [vmem:[#allocation5 + $0x2e4] ss:$8 sps:$4 sm:$0xff]  }
  0x75   :  { %772 = vmatpush1.bf16.msra.mxu0 %v1453_v33  ;;  %v1507_v33 = vld [vmem:[#allocation5 + $0x270] ss:$8 sps:$4 sm:$0xff]  }
  0x76   :  { %773 = vmatprep.subr.bf16.mxu0 %v1454_v34  ;;  %v1515_v34 = vld [vmem:[#allocation5 + $0x284] ss:$8 sps:$4 sm:$0xff]  }
  0x77   :  { %727 = vmatpush1.bf16.msra.mxu1 %v1534_v57  ;;  %v94_v57 = vld [vmem:[#allocation2 + $0x58] sm:$0xff] }
  0x78   :  { %728 = vmatprep.subr.bf16.mxu1 %v1535_v60  ;;  %v1561_v60 = vld [vmem:[#allocation5 + $0x300] ss:$8 sps:$4 sm:$0xff]  }
  0x79   :  { %774 = vmatpush1.bf16.msra.mxu0 %v1456_v37  ;;  %v1513_v37 = vld [vmem:[#allocation5 + $0x280] ss:$8 sps:$4 sm:$0xff]  }
  0x7a   :  { %775 = vmatprep.subr.bf16.mxu0 %v1457_v38  ;;  %v1521_v38 = vld [vmem:[#allocation5 + $0x294] ss:$8 sps:$4 sm:$0xff]  }
  0x7b   :  { %729 = vmatpush1.bf16.msra.mxu1 %v1540_v1  ;;  %v1577_v1 = vld [vmem:[#allocation7 + $0x20] sm:$0xff]  }
  0x7c   :  { %730 = vmatprep.subr.bf16.mxu1 %v1541_v2  ;;  %v1578_v2 = vld [vmem:[#allocation7 + $0x68] sm:$0xff]  }
  0x7d   :  { %776 = vmatpush1.bf16.msra.mxu0 %v1459_v41  ;;  %v1519_v41 = vld [vmem:[#allocation5 + $0x290] ss:$8 sps:$4 sm:$0xff]  }
  0x7e   :  { %777 = vmatprep.subr.bf16.mxu0 %v1460_v42  ;;  %v1527_v42 = vld [vmem:[#allocation5 + $0x2a4] ss:$8 sps:$4 sm:$0xff]  }
  0x7f   :  { %731 = vmatpush1.bf16.msra.mxu1 %v1546_v7  ;;  %v1583_v7 = vld [vmem:[#allocation7 + $0x38] sm:$0xff]  }
  0x80   :  { %732 = vmatprep.subr.bf16.mxu1 %v1547_v9 }
  0x81   :  { %778 = vmatpush1.bf16.msra.mxu0 %v1462_v45  ;;  %v1525_v45 = vld [vmem:[#allocation5 + $0x2a0] ss:$8 sps:$4 sm:$0xff]  }
  0x82   :  { %779 = vmatprep.subr.bf16.mxu0 %v1463_v46  ;;  %v1533_v46 = vld [vmem:[#allocation5 + $0x2b4] ss:$8 sps:$4 sm:$0xff]  }
  0x83   :  { %733 = vmatpush1.bf16.msra.mxu1 %v1552_v12 }
  0x84   :  { %734 = vmatprep.subr.bf16.mxu1 %v1553_v13  ;;  %v204_v13 = vlaneseq }
  0x85   :  { %780 = vmatpush1.bf16.msra.mxu0 %v1465_v49  ;;  %v1537_v49 = vld [vmem:[#allocation5 + $0x2c0] ss:$8 sps:$4 sm:$0xff]  }
  0x86   :  { %781 = vmatprep.subr.bf16.mxu0 %v1466_v50  ;;  %v1545_v50 = vld [vmem:[#allocation5 + $0x2d4] ss:$8 sps:$4 sm:$0xff]  }
  0x87   :  { %735 = vmatpush1.bf16.msra.mxu1 %v1558_v17 }
  0x88   :  { %736 = vmatprep.subr.bf16.mxu1 %v1559_v19 }
  0x89   :  { %782 = vmatpush1.bf16.msra.mxu0 %v1468_v53  ;;  %v1549_v53 = vld [vmem:[#allocation5 + $0x2e0] ss:$8 sps:$4 sm:$0xff]  }
  0x8a   :  { %794 = vmatprep.subr.bf16.mxu0 %v1471_v56  ;;  %v87_v56 = vld [vmem:[#allocation2 + $0x20] sm:$0xff] }
  0x8b   :  { %737 = vmatpush1.bf16.msra.mxu1 %v1564_v20 }
  0x8c   :  { %784 = vmatmul.mubr.bf16.vlgmr.msra.gmra.mrb[0].mxu0 %v99_v59  ;;  %738 = vmatprep.subr.bf16.mxu1 %v1565_v21  ;;  %v101_v59 = vpack.c.bf16 %v94_v57, %v87_v56 }
  0x8d   :  { %795 = vmatpush1.bf16.msra.mxu0 %v1469_v58  ;;  %826 = vmatprep.mubr.bf16.mxu0 %v102_v0  ;;  %v1563_v58 = vld [vmem:[#allocation5 + $0x304] ss:$8 sps:$4 sm:$0xff]  }
  0x8e   :  { %796 = vmatprep.subr.bf16.mxu0 %v1474_v63  ;;  %v96_v63 = vld [vmem:[#allocation2 + $0x68] sm:$0xff] }
  0x8f   :  { %739 = vmatpush1.bf16.msra.mxu1 %v1567_v24  ;;  %v103_v0 = vpack.c.bf16 %v96_v63, %v89_v62 }
  0x90   :  { %1340 = vmatprep.subr.bf16.mxu1 %v1568_v27 }
  0x91   :  { %797 = vmatpush1.bf16.msra.mxu0 %v1472_v3  ;;  %v1579_v3 = vld [vmem:[#allocation7 + $0x28] sm:$0xff]  }
  0x92   :  { %798 = vmatprep.subr.bf16.mxu0 %v1479_v4  ;;  %741 = vmatmul.mubr.bf16.vlgmr.msra.gmra.mrb[0].mxu1 %v97_v30  ;;  %v1580_v4 = vld [vmem:[#allocation7 + $0x70] sm:$0xff]  }
  0x93   :  { %1341 = vmatpush3.bf16.msra.mxu1 %v1569_v31 }
  0x94   :  { %1342 = vmatprep.subr.bf16.mxu1 %v1570_v32 }
  0x95   :  { %799 = vmatpush1.bf16.msra.mxu0 %v1477_v10 }
  0x96   :  { %800 = vmatprep.subr.bf16.mxu0 %v1485_v11 }
  0x97   :  { %1343 = vmatpush3.bf16.msra.mxu1 %v1571_v35 }
  0x98   :  { %1344 = vmatprep.subr.bf16.mxu1 %v1572_v36 }
  0x99   :  { %801 = vmatpush1.bf16.msra.mxu0 %v1483_v14  ;;  %v205_v14 = vshrl.u32 %v204_v13, 7 }
  0x9a   :  { %802 = vmatprep.subr.bf16.mxu0 %v1491_v15 }
  0x9b   :  { %1345 = vmatpush3.bf16.msra.mxu1 %v1573_v39  ;;  %v206_v15 = vsub.s32 0, %v205_v14  ;;  %v210_v17 = vsub.s32 1, %v205_v14  ;;  %v1585_v39 = vld [vmem:[#allocation8 + $0x8] sm:$0xff]  }
  0x9c   :  { %1346 = vmatprep.subr.bf16.mxu1 %v1574_v40  ;;  %v1586_v40 = vld [vmem:[#allocation8 + $0x10] sm:$0xff]  }
  0x9d   :  { %803 = vmatpush1.bf16.msra.mxu0 %v1489_v16  ;;  %v202_v16 = vld [vmem:[%s1844_s2] sm:$0x3] }
  0x9e   :  { %804 = vmatprep.subr.bf16.mxu0 %v1497_v18  ;;  %v207_v18 = vrot.slane %v202_v16, %v206_v15  ;;  %v211_v19 = vrot.slane %v202_v16, %v210_v17 }
  0x9f   :  { %1347 = vmatpush3.bf16.msra.mxu1 %v1575_v43  ;;  %v1589_v43 = vld [vmem:[#allocation8 + $0x28] sm:$0xff]  }
  0xa0   :  { %1348 = vmatprep.subr.bf16.mxu1 %v1576_v44  ;;  %v1590_v44 = vld [vmem:[#allocation8 + $0x30] sm:$0xff]  }
  0xa1   :  { %805 = vmatpush1.bf16.msra.mxu0 %v1495_v22 }
  0xa2   :  { %806 = vmatprep.subr.bf16.mxu0 %v1503_v23 }
  0xa3   :  { %1349 = vmatpush3.bf16.msra.mxu1 %v1577_v1 }
  0xa4   :  { %1350 = vmatprep.subr.bf16.mxu1 %v1578_v2 }
  0xa5   :  { %807 = vmatpush1.bf16.msra.mxu0 %v1501_v28 }
  0xa6   :  { %808 = vmatprep.subr.bf16.mxu0 %v1509_v29 }
  0xa7   :  { %1351 = vmatpush3.bf16.msra.mxu1 %v1579_v3 }
  0xa8   :  { %1352 = vmatprep.subr.bf16.mxu1 %v1580_v4 }
  0xa9   :  { %809 = vmatpush1.bf16.msra.mxu0 %v1507_v33 }
  0xaa   :  { %810 = vmatprep.subr.bf16.mxu0 %v1515_v34 }
  0xab   :  { %1353 = vmatpush3.bf16.msra.mxu1 %v1581_v5 }
  0xac   :  { %1354 = vmatprep.subr.bf16.mxu1 %v1582_v6 }
  0xad   :  { %811 = vmatpush1.bf16.msra.mxu0 %v1513_v37 }
  0xae   :  { %812 = vmatprep.subr.bf16.mxu0 %v1521_v38  ;;  %v1584_v38 = vld [vmem:[#allocation8] sm:$0xff]  }
  0xaf   :  { %1355 = vmatpush3.bf16.msra.mxu1 %v1583_v7 }
  0xb0   :  { %1371 = vmatprep.subr.bf16.mxu1 %v1721_v8 }
  0xb1   :  { %813 = vmatpush1.bf16.msra.mxu0 %v1519_v41  ;;  %v1587_v41 = vld [vmem:[#allocation8 + $0x18] sm:$0xff]  }
  0xb2   :  { %814 = vmatprep.subr.bf16.mxu0 %v1527_v42  ;;  %v1588_v42 = vld [vmem:[#allocation8 + $0x20] sm:$0xff]  }
  0xb5   :  { %815 = vmatpush1.bf16.msra.mxu0 %v1525_v45  ;;  %v1591_v45 = vld [vmem:[#allocation8 + $0x38] sm:$0xff]  }
  0xb6   :  { %816 = vmatprep.subr.bf16.mxu0 %v1533_v46 }
  0xb9   :  { %817 = vmatpush1.bf16.msra.mxu0 %v1531_v47  ;;  %v1305_v47 = vld [vmem:[%s1846_s4] ss:$0 sm:$0xff]  ;;  %s1192_s4 = sshll.u32 %s1723_s9, 4  ;;  %s1193_s4 = int_to_ptr.vmem [resolvable:$true] %s1192_s4 }
  0xba   :  { %818 = vmatprep.subr.bf16.mxu0 %v1539_v48  ;;  %s1680_s10 = scalar_lea.vmem %s1193_s4, 128  ;;  %p1685_p5 = scmp.lt.s32.totalorder %s1193_s4, %s1193_s4 }
  0xbb   :  { %p1681_p4 = scmp.ne.s32.totalorder %s1193_s4, %s1680_s10  ;;  %p1686_p6 = scmp.lt.s32.totalorder %s1680_s10, %s1680_s10 }
  0xbd   :  { %819 = vmatpush1.bf16.msra.mxu0 %v1537_v49  ;;  %p1687_p7 = por %p1686_p6, %p1685_p5 }
  0xbe   :  { %820 = vmatprep.subr.bf16.mxu0 %v1545_v50 }
  0xbf   :  { %p1688_p8 = pnand %p1687_p7, %p1681_p4 }
  0xc1   :  { %821 = vmatpush1.bf16.msra.mxu0 %v1543_v51 }
  0xc2   :  { %822 = vmatprep.subr.bf16.mxu0 %v1551_v52 }
  0xc5   :  { %823 = vmatpush1.bf16.msra.mxu0 %v1549_v53 }
  0xc6   :  { %824 = vmatprep.subr.bf16.mxu0 %v1557_v54 }
  0xc9   :  { %825 = vmatpush1.bf16.msra.mxu0 %v1555_v55 }
  0xca   :  { %837 = vmatprep.subr.bf16.mxu0 %v1563_v58  ;;  %v1322_v58 = vld [vmem:[%s1848_s6] ss:$0 sm:$0xff] }
  0xcc   :  { %827 = vmatmul.mubr.bf16.vlgmr.msra.gmra.mrb[0].mxu0 %v101_v59 }
  0xcd   :  { %838 = vmatpush1.bf16.msra.mxu0 %v1561_v60  ;;  %869 = vmatprep.mubr.bf16.mxu0 %v1720_v61 }
  0xd8   :  { %1304 = vmatmul.mubr.msk.bf16.vlgmr.msra.gmra.mrb[0].mxu0 %vm704_vm0, %v103_v0 }
 0x165   :  { %v742_v9 = vpop.f32.mrb[0].mxu1 }
 0x166   :  { %v744_v10 = vpop.f32.mrb[1].mxu1  ;;  %v743_v20 = vadd.f32 %v742_v9, %v207_v18 }
 0x167   :  { %v746_v11 = vpop.f32.mrb[2].mxu1  ;;  %v745_v21 = vadd.f32 %v744_v10, %v211_v19 }
 0x168   :  { %v748_v12 = vpop.f32.mrb[3].mxu1  ;;  %v747_v23 = vadd.f32 %v746_v11, %v207_v18 }
 0x169   :  { %v749_v26 = vadd.f32 %v748_v12, %v211_v19 }
 0x1ab   :  { %v871_v22 = vpop.f32.mrb[0].mxu0 }
 0x1ac   :  { %v1392_v24 = vadd.f32 %v871_v22, %v743_v20  ;;  %v873_v25 = vpop.f32.mrb[1].mxu0 }
 0x1ad   :  { %v1394_v27 = vadd.f32 %v873_v25, %v745_v21  ;;  %v875_v28 = vpop.f32.mrb[2].mxu0 }
 0x1ae   :  { %v1396_v29 = vadd.f32 %v875_v28, %v747_v23  ;;  %v877_v30 = vpop.f32.mrb[3].mxu0  ;;  %v880_v32 = vmax.f32 %v1392_v24, 0.0 }
 0x1af   :  { %v1398_v31 = vadd.f32 %v877_v30, %v749_v26  ;;  %v881_v34 = vmax.f32 %v1394_v27, 0.0 }
 0x1b0   :  { %v882_v33 = vmax.f32 %v1396_v29, 0.0 }
 0x1b1   :  { %v883_v35 = vmax.f32 %v1398_v31, 0.0 }
 0x1b2   :  { %v884_v36 = vpack.c.bf16 %v882_v33, %v880_v32 }
 0x1b3   :  { %v885_v37 = vpack.c.bf16 %v883_v35, %v881_v34 }
 0x1b5   :  { %1053 = vmatprep.mubr.bf16.mxu1 %v885_v37 }
 0x1b6   :  { %1054 = vmatmul.mubr.bf16.vlgmr.msra.gmra.mrb[4].mxu1 %v884_v36 }
 0x1b7   :  { %1372 = vmatpush3.bf16.msra.mxu1 %v1584_v38  ;;  %1387 = vmatprep.mubr.msk.bf16.mxu1 %vm1722_vm1, %v1721_v8 }
 0x1b8   :  { %1373 = vmatprep.subr.bf16.mxu1 %v1721_v8 }
 0x1bb   :  { %1374 = vmatpush3.bf16.msra.mxu1 %v1585_v39 }
 0x1bc   :  { %1375 = vmatprep.subr.bf16.mxu1 %v1721_v8 }
 0x1bf   :  { %1376 = vmatpush3.bf16.msra.mxu1 %v1586_v40 }
 0x1c0   :  { %1377 = vmatprep.subr.bf16.mxu1 %v1721_v8 }
 0x1c3   :  { %1378 = vmatpush3.bf16.msra.mxu1 %v1587_v41 }
 0x1c4   :  { %1379 = vmatprep.subr.bf16.mxu1 %v1721_v8 }
 0x1c7   :  { %1380 = vmatpush3.bf16.msra.mxu1 %v1588_v42 }
 0x1c8   :  { %1381 = vmatprep.subr.bf16.mxu1 %v1721_v8 }
 0x1cb   :  { %1382 = vmatpush3.bf16.msra.mxu1 %v1589_v43 }
 0x1cc   :  { %1383 = vmatprep.subr.bf16.mxu1 %v1721_v8 }
 0x1cf   :  { %1384 = vmatpush3.bf16.msra.mxu1 %v1590_v44 }
 0x1d0   :  { %1385 = vmatprep.subr.bf16.mxu1 %v1721_v8 }
 0x1d3   :  { %1386 = vmatpush3.bf16.msra.mxu1 %v1591_v45 }
 0x289   :  { %v1356_v46 = vpop.f32.mrb[4].mxu1 }
 0x28a   :  { %v1357_v48 = vpop.f32.mrb[5].mxu1 }
 0x28b   :  { %v1358_v49 = vadd.f32 %v1357_v48, %v1356_v46  ;;  %v1359_v50 = vpop.f32.mrb[6].mxu1 }
 0x28c   :  { %v1360_v51 = vpop.f32.mrb[7].mxu1 }
 0x28d   :  { %v1056_v52 = vadd.f32 %v1358_v49, %v1305_v47  ;;  %v1361_v53 = vadd.f32 %v1360_v51, %v1359_v50 }
 0x28f   :  { %v1059_v54 = vadd.f32 %v1361_v53, %v1305_v47  ;;  %v1062_v55 = vmax.f32 %v1056_v52, 0.0 }
 0x291   :  { %v1063_v56 = vmax.f32 %v1059_v54, 0.0 }
 0x293   :  { %v1064_v57 = vpack.c.bf16 %v1063_v56, %v1062_v55 }
 0x295   :  { %1388 = vmatmul.mubr.bf16.vlgmr.msra.gmra.mrb[8].mxu1 %v1064_v57 }
 0x368   :  { %v1170_v59 = vpop.f32.mrb[8].mxu1 }
 0x369   :  { %v1389_v60 = vpop.f32.mrb[9].mxu1  ;;  %v1171_v62 = vadd.f32 %v1322_v58, %v1170_v59 }
 0x36a   :  { %v1173_v61 = vpop.f32.mrb[10].mxu1 }
 0x36b   :  { %v1174_v63 = vadd.f32 %v1322_v58, %v1173_v61  ;;  %v1390_v0 = vpop.f32.mrb[11].mxu1 }
 0x36d   :  { %v1338_v1 = vpack.c.bf16 %v1174_v63, %v1171_v62 }
 0x36f   :  { %1339 = vst [vmem:[#allocation10] sm:$0xff] %v1338_v1  }
 0x370   :  { %1691 = shalt.err (!%p1688_p8)
}
 0x371   :  { %s1692_s12 = scalar_lea.hbm %s1849_s7, 128 }
 0x372   :  { %p1693_p9 = scmp.ne.s32.totalorder %s1849_s7, %s1692_s12  ;;  %p1696_p10 = scmp.lt.u32.totalorder %s1692_s12, %s1849_s7 }
 0x374   :  { %p1698_p11 = pnand %p1696_p10, %p1693_p9 }
 0x376   :  { %1701 = shalt.err (!%p1698_p11)
}
 0x377   :  { %1198 = dma.vmem_to_hbm [thread:$0]  %s1193_s4, 128, %s1849_s7, [#allocation4], %s1717_s0, %s1717_s0, %s1718_s15  }
 0x378   :  { %1708 = dma.done.wait [#allocation4], 128  }
 0x379   :  { %1709 = vsyncadd [#allocation4], 4294967168 }
 0x37a   :  { %1202 = vsyncpa [#allocation3], 1 }
 0x37b   :  { %1203 = vsyncpa [#allocation6], 1 }
 0x37c   :  { %1204 = vsyncpa [#allocation9], 1 }
 0x37d   :  { %1205 = vsyncpa [#allocation4], 1 }

</bundles_post_ra>
